<compile_context>
chip_gen: v7x
topology: tpu7x:2x2x1
jax: 0.10.0
libtpu: 0.0.40
codegen_flags: <defaults>
</compile_context>

<pallas_src>
import functools

import numpy as np
import jax
import jax.numpy as jnp
from jax.experimental import pallas as pl
from jax.experimental.pallas import tpu as pltpu


# --------------------------------------------------------------------------- #
# Kernel 1: K/V projection — computed once per batch element (never per query
# tile), so the main attention kernel can keep both grid axes "parallel".
# --------------------------------------------------------------------------- #
def kv_projection_kernel(x_ref, wk_ref, bk_ref, wv_ref, bv_ref, k_ref, v_ref):
    x = x_ref[0]                                       # (TR, H) bf16
    f32 = jnp.float32
    k = jnp.dot(x, wk_ref[...], preferred_element_type=f32) + bk_ref[0].astype(f32)
    v = jnp.dot(x, wv_ref[...], preferred_element_type=f32) + bv_ref[0].astype(f32)
    k_ref[0] = k.astype(k_ref.dtype)
    v_ref[0] = v.astype(v_ref.dtype)


# --------------------------------------------------------------------------- #
# Kernel 2: Q projection + per-head attention + Wo + residual/LN + FFN + LN.
# One grid step == (one batch element) x (one query tile).
# --------------------------------------------------------------------------- #
def bert4rec_block_kernel(xq_ref, k_ref, v_ref, keymask_ref,
                          wq_ref, bq_ref, wo_ref, bo_ref, ln1g_ref, ln1b_ref,
                          w1_ref, b1_ref, w2_ref, b2_ref, ln2g_ref, ln2b_ref,
                          out_ref, attn_ref, ctx_scratch,
                          *, num_heads, head_dim, f_tile, eps=1e-6):
    f32 = jnp.float32
    xq = xq_ref[0]                        # (TQ, H) bf16 — query rows of this tile
    k = k_ref[0]                          # (S,  H) bf16 — pre-projected keys
    v = v_ref[0]                          # (S,  H) bf16 — pre-projected values
    TQ, H = xq.shape

    # 1/sqrt(dh) folded into q once ((TQ,H) mul) instead of per-head (TQ,S) muls.
    scale = f32(1.0 / np.sqrt(head_dim))
    q = ((jnp.dot(xq, wq_ref[...], preferred_element_type=f32)
          + bq_ref[0].astype(f32)) * scale).astype(jnp.bfloat16)       # (TQ, H)

    # Key-padding mask rebuilt in-kernel from a (1, S) key-valid row.
    masked = keymask_ref[0] == 0.0                                     # (1, S) bool
    neg_big = f32(-1e9)

    # --- multi-head attention: heads = static lane slices; per-head context is
    #     stored straight into a (TQ,H) VMEM scratch at static lane offsets. ---
    for h in range(num_heads):
        sl = slice(h * head_dim, (h + 1) * head_dim)
        s_h = jnp.einsum('qd,kd->qk', q[:, sl], k[:, sl],
                         preferred_element_type=f32)                   # (TQ, S)
        s_h = jnp.where(masked, neg_big, s_h)                          # masked_fill
        s_h = s_h - jnp.max(s_h, axis=-1, keepdims=True)
        p_h = jnp.exp(s_h)
        inv = pl.reciprocal(jnp.sum(p_h, axis=-1, keepdims=True), approx=True)
        attn_h = p_h * inv                                             # softmax over keys
        attn_ref[0, h] = attn_h.astype(attn_ref.dtype)
        ctx_scratch[:, sl] = jnp.dot(attn_h.astype(jnp.bfloat16), v[:, sl],
                                     preferred_element_type=f32)       # (TQ, dh)

    attn_out = (jnp.dot(ctx_scratch[...].astype(jnp.bfloat16), wo_ref[...],
                        preferred_element_type=f32) + bo_ref[0].astype(f32))

    def layer_norm(y, g_r, b_r):
        mu = jnp.mean(y, axis=-1, keepdims=True)
        d = y - mu
        var = jnp.mean(d * d, axis=-1, keepdims=True)
        return d * jax.lax.rsqrt(var + eps) * g_r[0].astype(f32) + b_r[0].astype(f32)

    h1 = layer_norm(attn_out + xq.astype(f32), ln1g_ref, ln1b_ref)     # (TQ, H) f32

    # --- position-wise FFN, tiled over the 4H hidden dimension ---------------
    h1_bf = h1.astype(jnp.bfloat16)
    F = w1_ref.shape[1]
    n_f = F // f_tile

    def ffn_step(off, acc):
        t = (jnp.dot(h1_bf, w1_ref[:, pl.ds(off, f_tile)],
                     preferred_element_type=f32)
             + b1_ref[:, pl.ds(off, f_tile)].astype(f32))
        t = jax.nn.gelu(t, approximate=False)      # exact erf-GELU (torch default)
        return acc + jnp.dot(t.astype(jnp.bfloat16),
                             w2_ref[pl.ds(off, f_tile), :],
                             preferred_element_type=f32)

    ff = jnp.zeros((TQ, H), f32)
    if n_f <= 2:
        for fi in range(n_f):                       # short: unrolled is fine
            ff = ffn_step(fi * f_tile, ff)
    else:
        ff = jax.lax.fori_loop(                     # long: bound live ranges
            0, n_f,
            lambda fi, acc: ffn_step(pl.multiple_of(fi * f_tile, f_tile), acc),
            ff)
    ff = ff + b2_ref[0].astype(f32)

    out_ref[0] = layer_norm(ff + h1, ln2g_ref, ln2b_ref).astype(out_ref.dtype)


# --------------------------------------------------------------------------- #
# Wrapper / tiling
# --------------------------------------------------------------------------- #
def _pick_tile(n, preferred):
    for t in (preferred, 512, 256, 128, 64, 32, 16, 8):
        if t <= n and n % t == 0:
            return t
    return n


def _tpu_vmem_capacity():
    try:
        return pltpu.get_tpu_info().vmem_capacity_bytes
    except Exception:
        return 128 * 1024 * 1024


def _chip_tile_defaults():
    """Per-chip (q_tile, f_tile, vmem_capacity) preferences."""
    kind = ""
    try:
        kind = jax.devices()[0].device_kind.lower()
    except Exception:
        pass
    vmem = _tpu_vmem_capacity()
    if "v7" in kind or vmem <= 64 * 1024 * 1024:
        return 128, 256, vmem      # v7x: 64 MiB VMEM -> halve the working set
    if "v5" in kind:
        return 128, 512, vmem      # v5e: 128-wide MXU, TQ=256 buys little
    return 256, 512, vmem          # v6e / default: fill the 256x256 MXU


def _vmem_limit_bytes(vmem_capacity):
    return int(min(vmem_capacity * 0.85, 100 * 1024 * 1024))


def _full_spec(arr, single_buffer):
    """Whole-array, grid-invariant input. Single-buffer if the JAX supports it."""
    zeros = (0,) * arr.ndim
    idx = lambda b, t, _z=zeros: _z
    if single_buffer and hasattr(pl, "Buffered"):
        try:
            return pl.BlockSpec(arr.shape, idx, pipeline_mode=pl.Buffered(1))
        except TypeError:
            pass
    return pl.BlockSpec(arr.shape, idx)


def bert4rec_block(x, mask, params, num_heads, *, q_tile=None, f_tile=None,
                   attn_dtype=jnp.bfloat16):
    """BERT4RecBlock forward (eval mode).

    Returns (output_enc f32 (B,S,H), attn_dist (B,nH,S,S) in attn_dtype — bf16 by
    default to halve HBM writeback; pass jnp.float32 for full-precision attention).
    `mask` may be the PyTorch-style (B,1,S,S) padding mask, (B,1,S), or a (B,S)
    key-valid vector; it is reduced to the (B,S) key-valid form.
    """
    B, S, H = x.shape
    head_dim = H // num_heads
    F = params['w1'].shape[1]

    q_pref, f_pref, vmem_cap = _chip_tile_defaults()
    TQ = _pick_tile(S, q_tile or q_pref)
    TF = _pick_tile(F, f_tile or f_pref)
    nQ = S // TQ
    vmem_limit = _vmem_limit_bytes(vmem_cap)

    # bf16 MXU operands; f32 accumulation happens inside the kernels.
    x_bf = x.astype(jnp.bfloat16)

    # Reduce the mask to a per-batch key-valid row (padding-style masks).
    # TODO(synk): arbitrary per-query masks (e.g. causal) would need the full
    # (B,1,S,S) mask path instead of this (B,S) reduction.
    if mask.ndim == 4:
        key_valid = mask[:, 0, 0, :]
    elif mask.ndim == 3:
        key_valid = mask[:, 0, :]
    else:
        key_valid = mask
    key_valid = key_valid.astype(jnp.float32).reshape(B, 1, S)

    matmul_weights = {'wq', 'wk', 'wv', 'wo', 'w1', 'w2'}

    def wt(name):
        return params[name].astype(jnp.bfloat16 if name in matmul_weights
                                   else jnp.float32)

    def run(single_buffer):
        # ---- K/V projection: once per batch element, not per query tile -----
        kv_w = [wt('wk'), wt('bk'), wt('wv'), wt('bv')]
        TR = _pick_tile(S, 256)
        k_bf, v_bf = pl.pallas_call(
            kv_projection_kernel,
            out_shape=(jax.ShapeDtypeStruct((B, S, H), jnp.bfloat16),
                       jax.ShapeDtypeStruct((B, S, H), jnp.bfloat16)),
            grid=(B, S // TR),
            in_specs=[pl.BlockSpec((1, TR, H), lambda b, r: (b, r, 0))]
                     + [_full_spec(a, single_buffer) for a in kv_w],
            out_specs=(pl.BlockSpec((1, TR, H), lambda b, r: (b, r, 0)),
                       pl.BlockSpec((1, TR, H), lambda b, r: (b, r, 0))),
            compiler_params=pltpu.CompilerParams(
                dimension_semantics=("parallel", "parallel"),
                vmem_limit_bytes=vmem_limit),
        )(x_bf, *kv_w)

        # ---- fused attention + FFN block -------------------------------------
        main_w_names = ('wq', 'bq', 'wo', 'bo', 'ln1_g', 'ln1_b',
                        'w1', 'b1', 'w2', 'b2', 'ln2_g', 'ln2_b')
        main_w = [wt(n) for n in main_w_names]

        in_specs = [
            pl.BlockSpec((1, TQ, H), lambda b, qi: (b, qi, 0)),   # x: query tile
            pl.BlockSpec((1, S, H), lambda b, qi: (b, 0, 0)),     # K (invariant in qi)
            pl.BlockSpec((1, S, H), lambda b, qi: (b, 0, 0)),     # V (invariant in qi)
            pl.BlockSpec((1, 1, S), lambda b, qi: (b, 0, 0)),     # key-valid row
        ] + [_full_spec(a, single_buffer) for a in main_w]

        out_specs = (
            pl.BlockSpec((1, TQ, H), lambda b, qi: (b, qi, 0)),                # output_enc
            pl.BlockSpec((1, num_heads, TQ, S), lambda b, qi: (b, 0, qi, 0)),  # attn_dist
        )

        kernel = functools.partial(bert4rec_block_kernel, num_heads=num_heads,
                                   head_dim=head_dim, f_tile=TF)

        return pl.pallas_call(
            kernel,
            out_shape=(jax.ShapeDtypeStruct((B, S, H), jnp.float32),
                       jax.ShapeDtypeStruct((B, num_heads, S, S), attn_dtype)),
            grid=(B, nQ),               # keep qi innermost: K/V DMA'd once per batch
            in_specs=in_specs,
            out_specs=out_specs,
            scratch_shapes=[pltpu.VMEM((TQ, H), jnp.float32)],     # per-head ctx
            compiler_params=pltpu.CompilerParams(
                dimension_semantics=("parallel", "parallel"),
                vmem_limit_bytes=vmem_limit),
        )(x_bf, k_bf, v_bf, key_valid, *main_w)

    try:
        return run(single_buffer=True)
    except Exception:
        # Fallback for JAX versions that reject pipeline_mode=pl.Buffered(1).
        return run(single_buffer=False)


# --------------------------------------------------------------------------- #
# Parameter init + pure-JAX reference (for correctness checking)
# --------------------------------------------------------------------------- #
def init_params(key, hidden_size):
    H = hidden_size
    F = 4 * H
    ks = jax.random.split(key, 6)
    s = 0.02

    def w(k, shape):
        return (s * jax.random.normal(k, shape)).astype(jnp.float32)

    return {
        'wq': w(ks[0], (H, H)), 'bq': jnp.zeros((1, H), jnp.float32),
        'wk': w(ks[1], (H, H)), 'bk': jnp.zeros((1, H), jnp.float32),
        'wv': w(ks[2], (H, H)), 'bv': jnp.zeros((1, H), jnp.float32),
        'wo': w(ks[3], (H, H)), 'bo': jnp.zeros((1, H), jnp.float32),
        'ln1_g': jnp.ones((1, H), jnp.float32), 'ln1_b': jnp.zeros((1, H), jnp.float32),
        'w1': w(ks[4], (H, F)), 'b1': jnp.zeros((1, F), jnp.float32),
        'w2': w(ks[5], (F, H)), 'b2': jnp.zeros((1, H), jnp.float32),
        'ln2_g': jnp.ones((1, H), jnp.float32), 'ln2_b': jnp.zeros((1, H), jnp.float32),
    }


def reference_block(x, mask, params, num_heads):
    B, S, H = x.shape
    dh = H // num_heads

    def lin(v, w, b):
        return v @ w + b[0]

    def heads(v):
        return v.reshape(B, S, num_heads, dh).transpose(0, 2, 1, 3)

    q = heads(lin(x, params['wq'], params['bq']))
    k = heads(lin(x, params['wk'], params['bk']))
    v = heads(lin(x, params['wv'], params['bv']))
    scores = jnp.einsum('bhqd,bhkd->bhqk', q, k) / np.sqrt(dh)
    scores = jnp.where(mask == 0, -1e9, scores)
    attn = jax.nn.softmax(scores, axis=-1)
    ctx = jnp.einsum('bhqk,bhkd->bhqd', attn, v).transpose(0, 2, 1, 3).reshape(B, S, H)
    ao = lin(ctx, params['wo'], params['bo'])

    def ln(y, g, b, eps=1e-6):
        mu = y.mean(-1, keepdims=True)
        var = ((y - mu) ** 2).mean(-1, keepdims=True)
        return (y - mu) / jnp.sqrt(var + eps) * g[0] + b[0]

    h1 = ln(ao + x, params['ln1_g'], params['ln1_b'])
    ff = jax.nn.gelu(lin(h1, params['w1'], params['b1']), approximate=False)
    ff = lin(ff, params['w2'], params['b2'])
    out = ln(ff + h1, params['ln2_g'], params['ln2_b'])
    return out, attn


if __name__ == "__main__":
    B, S, H, NH = 2, 8, 32, 2

    key = jax.random.PRNGKey(0)
    k_x, k_p = jax.random.split(key)
    x = jax.random.normal(k_x, (B, S, H), dtype=jnp.float32)

    # Padding-style mask: batch 0 attends to all 8 positions, batch 1 only to the first 5.
    lengths = jnp.array([S, 5], dtype=jnp.int32)
    key_valid = (jnp.arange(S)[None, :] < lengths[:, None]).astype(jnp.float32)  # (B, S)
    mask = jnp.broadcast_to(key_valid[:, None, None, :], (B, 1, S, S))           # (B,1,S,S)

    params = init_params(k_p, H)

    out_enc, attn_dist = bert4rec_block(x, mask, params, NH)
    jax.block_until_ready(out_enc)
    jax.block_until_ready(attn_dist)

    ref_out, ref_attn = reference_block(x, mask, params, NH)
    # bf16 matmul operands (f32 accumulation) + bf16 attn output vs. pure-f32 reference.
    assert np.allclose(np.asarray(out_enc), np.asarray(ref_out), atol=2e-2, rtol=2e-2)
    assert np.allclose(np.asarray(attn_dist.astype(jnp.float32)),
                       np.asarray(ref_attn), atol=2e-2, rtol=2e-2)

    print("KERNEL_OK")
</pallas_src>

<mosaic_0001>
module attributes {stable_mosaic.version = 11 : i64} {
  func.func @kv_projection_kernel(%arg0: i32, %arg1: i32, %arg2: memref<1x8x32xbf16, #tpu.memory_space<vmem>>, %arg3: memref<32x32xbf16, #tpu.memory_space<vmem>>, %arg4: memref<1x32xf32, #tpu.memory_space<vmem>>, %arg5: memref<32x32xbf16, #tpu.memory_space<vmem>>, %arg6: memref<1x32xf32, #tpu.memory_space<vmem>>, %arg7: memref<1x8x32xbf16, #tpu.memory_space<vmem>>, %arg8: memref<1x8x32xbf16, #tpu.memory_space<vmem>>) attributes {dimension_semantics = [#tpu.dimension_semantics<parallel>, #tpu.dimension_semantics<parallel>], iteration_bounds = array<i64: 2, 1>, scalar_prefetch = 0 : i64, scratch_operands = 0 : i64, tpu.core_type = #tpu.core_type<tc>, window_params = [{transform_indices = @transform_0, window_bounds = array<i64: 1, 8, 32>}, {pipeline_mode = #tpu.pipeline_mode<synchronous>, transform_indices = @transform_1, window_bounds = array<i64: 32, 32>}, {pipeline_mode = #tpu.pipeline_mode<synchronous>, transform_indices = @transform_2, window_bounds = array<i64: 1, 32>}, {pipeline_mode = #tpu.pipeline_mode<synchronous>, transform_indices = @transform_3, window_bounds = array<i64: 32, 32>}, {pipeline_mode = #tpu.pipeline_mode<synchronous>, transform_indices = @transform_4, window_bounds = array<i64: 1, 32>}, {transform_indices = @transform_5, window_bounds = array<i64: 1, 8, 32>}, {transform_indices = @transform_6, window_bounds = array<i64: 1, 8, 32>}]} {
    %c0 = arith.constant 0 : index
    %c0_0 = arith.constant 0 : index
    %c0_1 = arith.constant 0 : index
    %0 = vector.load %arg2[%c0, %c0_0, %c0_1] : memref<1x8x32xbf16, #tpu.memory_space<vmem>>, vector<1x8x32xbf16>
    %1 = vector.shape_cast %0 : vector<1x8x32xbf16> to vector<8x32xbf16>
    %c0_2 = arith.constant 0 : index
    %c0_3 = arith.constant 0 : index
    %2 = vector.load %arg3[%c0_2, %c0_3] : memref<32x32xbf16, #tpu.memory_space<vmem>>, vector<32x32xbf16>
    %cst = arith.constant dense<0.000000e+00> : vector<8x32xf32>
    %3 = tpu.matmul %1, %2, %cst {dimension_numbers = #tpu.dot_dimension_numbers<[1], [0], [0], [1], [0, 0, 1, 1], [], []>} : vector<8x32xbf16>, vector<32x32xbf16>, vector<8x32xf32> -> vector<8x32xf32>
    %c0_4 = arith.constant 0 : index
    %c0_5 = arith.constant 0 : index
    %4 = vector.load %arg4[%c0_4, %c0_5] : memref<1x32xf32, #tpu.memory_space<vmem>>, vector<1x32xf32>
    %5 = vector.shape_cast %4 : vector<1x32xf32> to vector<32xf32>
    %6 = vector.shape_cast %5 : vector<32xf32> to vector<1x32xf32>
    %7 = vector.broadcast %6 : vector<1x32xf32> to vector<8x32xf32>
    %8 = arith.addf %3, %7 : vector<8x32xf32>
    %c0_6 = arith.constant 0 : index
    %c0_7 = arith.constant 0 : index
    %9 = vector.load %arg5[%c0_6, %c0_7] : memref<32x32xbf16, #tpu.memory_space<vmem>>, vector<32x32xbf16>
    %cst_8 = arith.constant dense<0.000000e+00> : vector<8x32xf32>
    %10 = tpu.matmul %1, %9, %cst_8 {dimension_numbers = #tpu.dot_dimension_numbers<[1], [0], [0], [1], [0, 0, 1, 1], [], []>} : vector<8x32xbf16>, vector<32x32xbf16>, vector<8x32xf32> -> vector<8x32xf32>
    %c0_9 = arith.constant 0 : index
    %c0_10 = arith.constant 0 : index
    %11 = vector.load %arg6[%c0_9, %c0_10] : memref<1x32xf32, #tpu.memory_space<vmem>>, vector<1x32xf32>
    %12 = vector.shape_cast %11 : vector<1x32xf32> to vector<32xf32>
    %13 = vector.shape_cast %12 : vector<32xf32> to vector<1x32xf32>
    %14 = vector.broadcast %13 : vector<1x32xf32> to vector<8x32xf32>
    %15 = arith.addf %10, %14 : vector<8x32xf32>
    %16 = arith.truncf %8 : vector<8x32xf32> to vector<8x32xbf16>
    %c0_11 = arith.constant 0 : index
    %c0_12 = arith.constant 0 : index
    %c0_13 = arith.constant 0 : index
    %17 = vector.load %arg7[%c0_11, %c0_12, %c0_13] : memref<1x8x32xbf16, #tpu.memory_space<vmem>>, vector<1x8x32xbf16>
    %18 = vector.shape_cast %17 : vector<1x8x32xbf16> to vector<8x32xbf16>
    %19 = vector.shape_cast %16 : vector<8x32xbf16> to vector<1x8x32xbf16>
    tpu.vector_store %arg7[%c0_11, %c0_12, %c0_13], %19 {strides = array<i32>} : memref<1x8x32xbf16, #tpu.memory_space<vmem>>, vector<1x8x32xbf16>,
    %20 = arith.truncf %15 : vector<8x32xf32> to vector<8x32xbf16>
    %c0_14 = arith.constant 0 : index
    %c0_15 = arith.constant 0 : index
    %c0_16 = arith.constant 0 : index
    %21 = vector.load %arg8[%c0_14, %c0_15, %c0_16] : memref<1x8x32xbf16, #tpu.memory_space<vmem>>, vector<1x8x32xbf16>
    %22 = vector.shape_cast %21 : vector<1x8x32xbf16> to vector<8x32xbf16>
    %23 = vector.shape_cast %20 : vector<8x32xbf16> to vector<1x8x32xbf16>
    tpu.vector_store %arg8[%c0_14, %c0_15, %c0_16], %23 {strides = array<i32>} : memref<1x8x32xbf16, #tpu.memory_space<vmem>>, vector<1x8x32xbf16>,
    return
  }
  func.func @transform_0(%arg0: i32, %arg1: i32) -> (i32, i32, i32) {
    %c0_i32 = arith.constant 0 : i32
    %c0_i32_0 = arith.constant 0 : i32
    return %arg0, %arg1, %c0_i32 : i32, i32, i32
  }
  func.func @transform_1(%arg0: i32, %arg1: i32) -> (i32, i32) {
    %c0_i32 = arith.constant 0 : i32
    %c0_i32_0 = arith.constant 0 : i32
    %c0_i32_1 = arith.constant 0 : i32
    return %c0_i32, %c0_i32_0 : i32, i32
  }
  func.func @transform_2(%arg0: i32, %arg1: i32) -> (i32, i32) {
    %c0_i32 = arith.constant 0 : i32
    %c0_i32_0 = arith.constant 0 : i32
    %c0_i32_1 = arith.constant 0 : i32
    return %c0_i32, %c0_i32_0 : i32, i32
  }
  func.func @transform_3(%arg0: i32, %arg1: i32) -> (i32, i32) {
    %c0_i32 = arith.constant 0 : i32
    %c0_i32_0 = arith.constant 0 : i32
    %c0_i32_1 = arith.constant 0 : i32
    return %c0_i32, %c0_i32_0 : i32, i32
  }
  func.func @transform_4(%arg0: i32, %arg1: i32) -> (i32, i32) {
    %c0_i32 = arith.constant 0 : i32
    %c0_i32_0 = arith.constant 0 : i32
    %c0_i32_1 = arith.constant 0 : i32
    return %c0_i32, %c0_i32_0 : i32, i32
  }
  func.func @transform_5(%arg0: i32, %arg1: i32) -> (i32, i32, i32) {
    %c0_i32 = arith.constant 0 : i32
    %c0_i32_0 = arith.constant 0 : i32
    return %arg0, %arg1, %c0_i32 : i32, i32, i32
  }
  func.func @transform_6(%arg0: i32, %arg1: i32) -> (i32, i32, i32) {
    %c0_i32 = arith.constant 0 : i32
    %c0_i32_0 = arith.constant 0 : i32
    return %arg0, %arg1, %c0_i32 : i32, i32, i32
  }
}

module attributes {stable_mosaic.version = 11 : i64} {
  func.func @kv_projection_kernel(%arg0: i32, %arg1: i32, %arg2: memref<1x8x32xbf16, #tpu.memory_space<vmem>>, %arg3: memref<32x32xbf16, #tpu.memory_space<vmem>>, %arg4: memref<1x32xf32, #tpu.memory_space<vmem>>, %arg5: memref<32x32xbf16, #tpu.memory_space<vmem>>, %arg6: memref<1x32xf32, #tpu.memory_space<vmem>>, %arg7: memref<1x8x32xbf16, #tpu.memory_space<vmem>>, %arg8: memref<1x8x32xbf16, #tpu.memory_space<vmem>>) attributes {dimension_semantics = [#tpu.dimension_semantics<parallel>, #tpu.dimension_semantics<parallel>], iteration_bounds = array<i64: 2, 1>, scalar_prefetch = 0 : i64, scratch_operands = 0 : i64, tpu.core_type = #tpu.core_type<tc>, window_params = [{transform_indices = @transform_0, window_bounds = array<i64: 1, 8, 32>}, {pipeline_mode = #tpu.pipeline_mode<synchronous>, transform_indices = @transform_1, window_bounds = array<i64: 32, 32>}, {pipeline_mode = #tpu.pipeline_mode<synchronous>, transform_indices = @transform_2, window_bounds = array<i64: 1, 32>}, {pipeline_mode = #tpu.pipeline_mode<synchronous>, transform_indices = @transform_3, window_bounds = array<i64: 32, 32>}, {pipeline_mode = #tpu.pipeline_mode<synchronous>, transform_indices = @transform_4, window_bounds = array<i64: 1, 32>}, {transform_indices = @transform_5, window_bounds = array<i64: 1, 8, 32>}, {transform_indices = @transform_6, window_bounds = array<i64: 1, 8, 32>}]} {
    %c0 = arith.constant 0 : index
    %c0_0 = arith.constant 0 : index
    %c0_1 = arith.constant 0 : index
    %0 = vector.load %arg2[%c0, %c0_0, %c0_1] : memref<1x8x32xbf16, #tpu.memory_space<vmem>>, vector<1x8x32xbf16>
    %1 = vector.shape_cast %0 : vector<1x8x32xbf16> to vector<8x32xbf16>
    %c0_2 = arith.constant 0 : index
    %c0_3 = arith.constant 0 : index
    %2 = vector.load %arg3[%c0_2, %c0_3] : memref<32x32xbf16, #tpu.memory_space<vmem>>, vector<32x32xbf16>
    %cst = arith.constant dense<0.000000e+00> : vector<8x32xf32>
    %3 = tpu.matmul %1, %2, %cst {dimension_numbers = #tpu.dot_dimension_numbers<[1], [0], [0], [1], [0, 0, 1, 1], [], []>} : vector<8x32xbf16>, vector<32x32xbf16>, vector<8x32xf32> -> vector<8x32xf32>
    %c0_4 = arith.constant 0 : index
    %c0_5 = arith.constant 0 : index
    %4 = vector.load %arg4[%c0_4, %c0_5] : memref<1x32xf32, #tpu.memory_space<vmem>>, vector<1x32xf32>
    %5 = vector.shape_cast %4 : vector<1x32xf32> to vector<32xf32>
    %6 = vector.shape_cast %5 : vector<32xf32> to vector<1x32xf32>
    %7 = vector.broadcast %6 : vector<1x32xf32> to vector<8x32xf32>
    %8 = arith.addf %3, %7 : vector<8x32xf32>
    %c0_6 = arith.constant 0 : index
    %c0_7 = arith.constant 0 : index
    %9 = vector.load %arg5[%c0_6, %c0_7] : memref<32x32xbf16, #tpu.memory_space<vmem>>, vector<32x32xbf16>
    %cst_8 = arith.constant dense<0.000000e+00> : vector<8x32xf32>
    %10 = tpu.matmul %1, %9, %cst_8 {dimension_numbers = #tpu.dot_dimension_numbers<[1], [0], [0], [1], [0, 0, 1, 1], [], []>} : vector<8x32xbf16>, vector<32x32xbf16>, vector<8x32xf32> -> vector<8x32xf32>
    %c0_9 = arith.constant 0 : index
    %c0_10 = arith.constant 0 : index
    %11 = vector.load %arg6[%c0_9, %c0_10] : memref<1x32xf32, #tpu.memory_space<vmem>>, vector<1x32xf32>
    %12 = vector.shape_cast %11 : vector<1x32xf32> to vector<32xf32>
    %13 = vector.shape_cast %12 : vector<32xf32> to vector<1x32xf32>
    %14 = vector.broadcast %13 : vector<1x32xf32> to vector<8x32xf32>
    %15 = arith.addf %10, %14 : vector<8x32xf32>
    %16 = arith.truncf %8 : vector<8x32xf32> to vector<8x32xbf16>
    %c0_11 = arith.constant 0 : index
    %c0_12 = arith.constant 0 : index
    %c0_13 = arith.constant 0 : index
    %17 = vector.load %arg7[%c0_11, %c0_12, %c0_13] : memref<1x8x32xbf16, #tpu.memory_space<vmem>>, vector<1x8x32xbf16>
    %18 = vector.shape_cast %17 : vector<1x8x32xbf16> to vector<8x32xbf16>
    %19 = vector.shape_cast %16 : vector<8x32xbf16> to vector<1x8x32xbf16>
    tpu.vector_store %arg7[%c0_11, %c0_12, %c0_13], %19 {strides = array<i32>} : memref<1x8x32xbf16, #tpu.memory_space<vmem>>, vector<1x8x32xbf16>,
    %20 = arith.truncf %15 : vector<8x32xf32> to vector<8x32xbf16>
    %c0_14 = arith.constant 0 : index
    %c0_15 = arith.constant 0 : index
    %c0_16 = arith.constant 0 : index
    %21 = vector.load %arg8[%c0_14, %c0_15, %c0_16] : memref<1x8x32xbf16, #tpu.memory_space<vmem>>, vector<1x8x32xbf16>
    %22 = vector.shape_cast %21 : vector<1x8x32xbf16> to vector<8x32xbf16>
    %23 = vector.shape_cast %20 : vector<8x32xbf16> to vector<1x8x32xbf16>
    tpu.vector_store %arg8[%c0_14, %c0_15, %c0_16], %23 {strides = array<i32>} : memref<1x8x32xbf16, #tpu.memory_space<vmem>>, vector<1x8x32xbf16>,
    return
  }
  func.func @transform_0(%arg0: i32, %arg1: i32) -> (i32, i32, i32) {
    %c0_i32 = arith.constant 0 : i32
    %c0_i32_0 = arith.constant 0 : i32
    return %arg0, %arg1, %c0_i32 : i32, i32, i32
  }
  func.func @transform_1(%arg0: i32, %arg1: i32) -> (i32, i32) {
    %c0_i32 = arith.constant 0 : i32
    %c0_i32_0 = arith.constant 0 : i32
    %c0_i32_1 = arith.constant 0 : i32
    return %c0_i32, %c0_i32_0 : i32, i32
  }
  func.func @transform_2(%arg0: i32, %arg1: i32) -> (i32, i32) {
    %c0_i32 = arith.constant 0 : i32
    %c0_i32_0 = arith.constant 0 : i32
    %c0_i32_1 = arith.constant 0 : i32
    return %c0_i32, %c0_i32_0 : i32, i32
  }
  func.func @transform_3(%arg0: i32, %arg1: i32) -> (i32, i32) {
    %c0_i32 = arith.constant 0 : i32
    %c0_i32_0 = arith.constant 0 : i32
    %c0_i32_1 = arith.constant 0 : i32
    return %c0_i32, %c0_i32_0 : i32, i32
  }
  func.func @transform_4(%arg0: i32, %arg1: i32) -> (i32, i32) {
    %c0_i32 = arith.constant 0 : i32
    %c0_i32_0 = arith.constant 0 : i32
    %c0_i32_1 = arith.constant 0 : i32
    return %c0_i32, %c0_i32_0 : i32, i32
  }
  func.func @transform_5(%arg0: i32, %arg1: i32) -> (i32, i32, i32) {
    %c0_i32 = arith.constant 0 : i32
    %c0_i32_0 = arith.constant 0 : i32
    return %arg0, %arg1, %c0_i32 : i32, i32, i32
  }
  func.func @transform_6(%arg0: i32, %arg1: i32) -> (i32, i32, i32) {
    %c0_i32 = arith.constant 0 : i32
    %c0_i32_0 = arith.constant 0 : i32
    return %arg0, %arg1, %c0_i32 : i32, i32, i32
  }
}

</mosaic_0001>

<bundles_post_ra>
// kernel: tpu_custom_call.1
= control target key start
LH: loop header
LB: loop body
LE: loop exit
PB: predicated region body
PF: predicated region fallthrough
CT: control target
= control target key end

     0   :  { %s1490_s0 = inlined_call_operand.hbm [shape: bf16[2,8,32], index: 0, kind: input, shape index: {}]   ;;  %s1491_s1 = inlined_call_operand.hbm [shape: bf16[32,32], index: 1, kind: input, shape index: {}]   ;;  %s1492_s2 = inlined_call_operand.hbm [shape: f32[1,32], index: 2, kind: input, shape index: {}]   ;;  %s1493_s3 = inlined_call_operand.hbm [shape: bf16[32,32], index: 3, kind: input, shape index: {}]   ;;  %s1494_s4 = inlined_call_operand.hbm [shape: f32[1,32], index: 4, kind: input, shape index: {}]   ;;  %s1495_s5 = inlined_call_operand.hbm [shape: bf16[2,8,32], index: 5, kind: output, shape index: {0}]   ;;  %s1496_s6 = inlined_call_operand.hbm [shape: bf16[2,8,32], index: 6, kind: output, shape index: {1}]  }
   0x1   :  { %1502 = sst [smem:[#allocation19_spill]] %s1491_s1 }
   0x2   :  { %12 = vsyncpa [#allocation3], 0 }
   0x3   :  { %14 = vsyncpa [#allocation3 + $0x1], 0 }
   0x4   :  { %15 = vsyncpa [#allocation6], 0 }
   0x5   :  { %16 = vsyncpa [#allocation9], 0 }
   0x6   :  { %17 = vsyncpa [#allocation4], 0 }
   0x7   :  { %19 = vsyncpa [#allocation4 + $0x1], 0 }
   0x8   :  { %20 = vsyncpa [#allocation13], 0 }
   0x9   :  { %22 = vsyncpa [#allocation13 + $0x1], 0  ;;  %s1155_s21 = smov 0   ;;  %s1157_s22 = smov 0  }
   0xa   :  { %s1159_s23 = smov 0   ;;  %s1161_s24 = smov 0  }
   0xb   :  { %s1163_s25 = smov 0   ;;  %s1165_s26 = smov 0  }
   0xc LB: > { %s1497_s27 = sadd.s32 4294967295, %s1107_s26   ;;  %p675_p0 = scmp.ge.s32.totalorder %s1107_s26, 1  ;;  %s1107_s26 = sphi %s1165_s26, %s28_s26   ;;  %s1103_s25 = sphi %s1163_s25, %s1524_s25   ;;  %s1099_s24 = sphi %s1161_s24, %s1523_s24   ;;  %s1095_s23 = sphi %s1159_s23, %s1522_s23   ;;  %s1091_s22 = sphi %s1157_s22, %s1521_s22   ;;  %s1087_s21 = sphi %s1155_s21, %s1520_s21  }
   0xd   : > { %p1189_p1 = scmp.eq.s32.totalorder %s1497_s27, 0  ;;  %p213_p2 = scmp.lt.s32.totalorder %s1107_s26, 3 }
   0xe   : > { %s1109_s30 = smov [#allocation5]   ;;  %s1110_s9 = smov [#allocation8]  }
   0xf   : > { %s1503_s28 = scalar_select %p1189_p1, 1, 0 }
  0x10   : > { %p1194_p3 = pnand %p675_p0, %p213_p2  ;;  %s225_s7 = sshll.u32 %s1109_s30, 4  ;;  %s1198_s7 = int_to_ptr.vmem [resolvable:$true] %s225_s7 }
  0x11   : > { %s249_s10 = sshll.u32 %s1110_s9, 4  ;;  %s1111_s11 = smov [#allocation7]   ;;  %s1209_s10 = int_to_ptr.vmem [resolvable:$true] %s249_s10 }
  0x12   : > { %s1504_s29 = scalar_select %p1194_p3, 1, 0 }
  0x13   : > { %p749_p4 = pneg %p1194_p3  ;;  %s1211_s12 = sshll.u32 %s1111_s11, 4  ;;  %s240_s12 = int_to_ptr.vmem [resolvable:$true] %s1211_s12 }
  0x14   : > { %s1506_s1 = sld [smem:[#allocation19_spill]] }
  0x15   : > { %p1205_p6 = pnand %p749_p4, %p1189_p1 }
  0x17   : > { %p1221_p8 = pneg %p1205_p6 }
  0x1a   : > { %s843_s15 = scalar_lea.hbm %s1506_s1, 256 }
  0x1b   : > { %p844_p7 = scmp.ne.s32.totalorder %s1506_s1, %s843_s15  ;;  %p850_p11 = scmp.lt.u32.totalorder %s843_s15, %s1506_s1 }
  0x1d   : > { %p846_p9 = pnand %p1221_p8, %p844_p7 }
  0x1f   : > { %p847_p10 = pneg %p846_p9 }
  0x21   : > { %p852_p12 = pnand %p850_p11, %p847_p10 }
  0x23   : > { %855 = shalt.err (!%p852_p12)
}
  0x24   : > { %s856_s30 = scalar_lea.vmem %s1198_s7, 256  ;;  %p864_p4 = scmp.lt.s32.totalorder %s1198_s7, %s1198_s7 }
  0x25   : > { %p857_p13 = scmp.ne.s32.totalorder %s1198_s7, %s856_s30  ;;  %p865_p5 = scmp.lt.s32.totalorder %s856_s30, %s856_s30 }
  0x27   : > { %p859_p0 = pnand %p857_p13, %p1221_p8  ;;  %p866_p7 = por %p865_p5, %p864_p4 }
  0x29   : > { %p860_p2 = pneg %p859_p0 }
  0x2b   : > { %p867_p9 = pnand %p866_p7, %p860_p2 }
  0x2d   : > { %870 = shalt.err (!%p867_p9)
}
  0x2e   : > { %s1112_s9 = smov 64   ;;  %s1113_s11 = smov 4  }
  0x2f   : > { %752 = dma.hbm_to_vmem [thread:$0]  (!%p1205_p6), %s1506_s1, 256, %s1198_s7, [#allocation6], %s1112_s9, %s1112_s9, %s1113_s11  }
  0x30   : > { %s871_s17 = scalar_lea.hbm %s1493_s3, 256 }
  0x31   : > { %p872_p5 = scmp.ne.s32.totalorder %s1493_s3, %s871_s17  ;;  %p878_p12 = scmp.lt.u32.totalorder %s871_s17, %s1493_s3 }
  0x33   : > { %p874_p10 = pnand %p872_p5, %p1221_p8 }
  0x35   : > { %p875_p11 = pneg %p874_p10 }
  0x37   : > { %p880_p13 = pnand %p878_p12, %p875_p11 }
  0x39   : > { %883 = shalt.err (!%p880_p13)
}
  0x3a   : > { %s884_s7 = scalar_lea.vmem %s1209_s10, 256  ;;  %p892_p7 = scmp.lt.s32.totalorder %s1209_s10, %s1209_s10 }
  0x3b   : > { %p885_p0 = scmp.ne.s32.totalorder %s1209_s10, %s884_s7  ;;  %p893_p9 = scmp.lt.s32.totalorder %s884_s7, %s884_s7 }
  0x3d   : > { %p887_p2 = pnand %p885_p0, %p1221_p8  ;;  %p894_p5 = por %p893_p9, %p892_p7 }
  0x3f   : > { %p888_p4 = pneg %p887_p2 }
  0x41   : > { %p895_p10 = pnand %p894_p5, %p888_p4 }
  0x43   : > { %898 = shalt.err (!%p895_p10)
}
  0x44   : > { %758 = dma.hbm_to_vmem [thread:$0]  (!%p1205_p6), %s1493_s3, 256, %s1209_s10, [#allocation9], %s1112_s9, %s1112_s9, %s1113_s11  }
  0x45   : > { %s899_s16 = scalar_lea.hbm %s1492_s2, 16 }
  0x46   : > { %p900_p11 = scmp.ne.s32.totalorder %s1492_s2, %s899_s16  ;;  %p906_p0 = scmp.lt.u32.totalorder %s899_s16, %s1492_s2 }
  0x48   : > { %p902_p12 = pnand %p900_p11, %p1221_p8 }
  0x4a   : > { %p903_p13 = pneg %p902_p12 }
  0x4c   : > { %p908_p2 = pnand %p906_p0, %p903_p13 }
  0x4e   : > { %911 = shalt.err (!%p908_p2)
}
  0x4f   : > { %s912_s7 = scalar_lea.vmem %s240_s12, 16  ;;  %s919_s10 = scalar_lea.vmem %s240_s12, 32 }
  0x50   : > { %p913_p4 = scmp.ne.s32.totalorder %s240_s12, %s912_s7  ;;  %p920_p5 = scmp.lt.s32.totalorder %s240_s12, %s240_s12 }
  0x51   : > { %p921_p10 = scmp.lt.s32.totalorder %s919_s10, %s912_s7 }
  0x52   : > { %p915_p7 = pnand %p913_p4, %p1221_p8 }
  0x53   : > { %p922_p3 = por %p921_p10, %p920_p5 }
  0x54   : > { %p916_p9 = pneg %p915_p7 }
  0x56   : > { %p923_p1 = pnand %p922_p3, %p916_p9 }
  0x58   : > { %926 = shalt.err (!%p923_p1)
}
  0x59   : > { %755 = dma.hbm_to_vmem [thread:$0]  (!%p1205_p6), %s1492_s2, 16, %s240_s12, [#allocation6]  }
  0x5a   : > { %s1114_s27 = smov [#allocation10]   ;;  %s927_s16 = scalar_lea.hbm %s1494_s4, 16 }
  0x5b   : > { %s263_s13 = sshll.u32 %s1114_s27, 4  ;;  %p928_p11 = scmp.ne.s32.totalorder %s1494_s4, %s927_s16  ;;  %s264_s13 = int_to_ptr.vmem [resolvable:$true] %s263_s13 }
  0x5c   : > { %p934_p12 = scmp.lt.u32.totalorder %s927_s16, %s1494_s4 }
  0x5d   : > { %p930_p1 = pnand %p928_p11, %p1221_p8 }
  0x5f   : > { %p931_p3 = pneg %p930_p1 }
  0x61   : > { %p936_p13 = pnand %p934_p12, %p931_p3 }
  0x63   : > { %939 = shalt.err (!%p936_p13)
}
  0x64   : > { %s940_s12 = scalar_lea.vmem %s264_s13, 16  ;;  %s947_s7 = scalar_lea.vmem %s264_s13, 32 }
  0x65   : > { %p941_p0 = scmp.ne.s32.totalorder %s264_s13, %s940_s12  ;;  %p948_p7 = scmp.lt.s32.totalorder %s264_s13, %s264_s13 }
  0x66   : > { %p949_p9 = scmp.lt.s32.totalorder %s947_s7, %s940_s12 }
  0x67   : > { %p943_p2 = pnand %p941_p0, %p1221_p8 }
  0x68   : > { %p950_p5 = por %p949_p9, %p948_p7 }
  0x69   : > { %p944_p4 = pneg %p943_p2 }
  0x6b   : > { %p951_p10 = pnand %p950_p5, %p944_p4 }
  0x6d   : > { %954 = shalt.err (!%p951_p10)
}
  0x6e   : > { %761 = dma.hbm_to_vmem [thread:$0]  (!%p1205_p6), %s1494_s4, 16, %s264_s13, [#allocation9]  }
  0x6f   : > { %s674_s18 = sadd.s32 4294967294, %s1107_s26   ;;  %s40_s11 = sadd.s32 1, %s1103_s25 }
  0x70   : > { %p42_p8 = scmp.ge.s32.totalorder %s40_s11, 2  ;;  %s49_s8 = sadd.s32 1, %s1095_s23 }
  0x71   : > { %p56_p11 = scmp.ne.s32.totalorder %s1095_s23, %s1091_s22  ;;  %p57_p1 = scmp.eq.s32.totalorder %s1107_s26, 0 }
  0x72   : > { %s1526_s11 = smov (%p42_p8, %s40_s11), 0  ;;  %p62_p12 = scmp.ne.s32.totalorder %s1091_s22, %s1087_s21 }
  0x73   : > { %p1310_p3 = por %p57_p1, %p56_p11  ;;  %s44_s13 = ssub.s32 %s1103_s25, %s1526_s11 }
  0x74   : > { %s1509_s14 = sadd.s32 4294967295, %s1107_s26   ;;  %p47_p13 = scmp.eq.s32.totalorder %s44_s13, 0 }
  0x75   : > { %p172_p6 = scmp.eq.s32.totalorder %s1509_s14, 1  ;;  %p1510_p0 = scmp.ne.s32.totalorder %s1503_s28, 0 }
  0x76   : > { %p178_p7 = scmp.eq.s32.totalorder %s674_s18, 1  ;;  %p777_p5 = scmp.lt.s32.totalorder %s1107_s26, 2 }
  0x77   : > { %p1322_p2 = por %p1510_p0, %p62_p12  ;;  %p1326_p4 = por %p172_p6, %p56_p11 }
  0x78   : > { %s1331_s17 = scalar_select %p47_p13, %s1095_s23, %s49_s8  }
  0x79   : > { %s1512_s16 = scalar_select %p1326_p4, 1, 0 }
  0x7a   : > { %p1333_p9 = por %p178_p7, %p62_p12  ;;  %s274_s20 = sand.u32 1, %s1095_s23  }
  0x7b   : > { %s682_s30 = sshll.u32 %s1103_s25, 6  ;;  %s681_s12 = sshll.u32 %s274_s20, 2 }
  0x7c   : > { %s1513_s19 = scalar_select %p1333_p9, 1, 0 }
  0x7d   : > { %s1343_s9 = scalar_lea.hbm %s1490_s0, %s682_s30  ;;  %s278_s18 = scalar_lea.vmem [#allocation2], %s681_s12 }
  0x7e   : > { %s286_s8 = sshll.u32 %s278_s18, 4  ;;  %p1347_p10 = pnand %p777_p5, %p1310_p3  ;;  %s1351_s8 = int_to_ptr.vmem [resolvable:$true] %s286_s8 }
  0x7f   : > { %s275_s14 = scalar_lea.sflag [#allocation3], %s274_s20  ;;  %s955_s1 = scalar_lea.hbm %s1343_s9, 64 }
  0x80   : > { %p956_p8 = scmp.ne.s32.totalorder %s1343_s9, %s955_s1  ;;  %p957_p11 = pneg %p1347_p10 }
  0x81   : > { %s960_s27 = scalar_lea.hbm %s1490_s0, 128  ;;  %p961_p3 = scmp.lt.u32.totalorder %s1343_s9, %s1490_s0 }
  0x82   : > { %p958_p1 = pnand %p957_p11, %p956_p8  ;;  %p962_p6 = scmp.lt.u32.totalorder %s960_s27, %s955_s1 }
  0x83   : > { %p964_p0 = scmp.lt.u32.totalorder %s955_s1, %s1343_s9 }
  0x84   : > { %p959_p12 = pneg %p958_p1  ;;  %p963_p13 = por %p962_p6, %p961_p3 }
  0x86   : > { %p965_p7 = por %p964_p0, %p963_p13 }
  0x88   : > { %p966_p5 = pnand %p965_p7, %p959_p12 }
  0x8a   : > { %969 = shalt.err (!%p966_p5)
}
  0x8b   : > { %s970_s20 = scalar_lea.vmem %s1351_s8, 64  ;;  %s1115_s18 = smov [#allocation2]  }
  0x8c   : > { %p971_p8 = scmp.ne.s32.totalorder %s1351_s8, %s970_s20  ;;  %s975_s30 = sshll.u32 %s1115_s18, 4  ;;  %s976_s30 = int_to_ptr.vmem [resolvable:$false] %s975_s30 }
  0x8d   : > { %s977_s12 = scalar_lea.vmem %s976_s30, 128  ;;  %p978_p4 = scmp.lt.s32.totalorder %s1351_s8, %s976_s30 }
  0x8e   : > { %p973_p1 = pnand %p971_p8, %p957_p11  ;;  %p979_p3 = scmp.lt.s32.totalorder %s977_s12, %s970_s20 }
  0x90   : > { %p974_p9 = pneg %p973_p1  ;;  %p980_p6 = por %p979_p3, %p978_p4 }
  0x92   : > { %p981_p13 = pnand %p980_p6, %p974_p9 }
  0x94   : > { %984 = shalt.err (!%p981_p13)
}
  0x95   : > { %765 = dma.hbm_to_vmem [thread:$0]  (!%p1347_p10), %s1343_s9, 64, %s1351_s8, %s275_s14  }
  0x96   : > { %p1515_p12 = scmp.ne.s32.totalorder %s1504_s29, 0 }
  0x97   : > { %s1381_s1 = sand.u32 (!%p1515_p12), 1, %s1091_s22  }
  0x98   : > { %295 = sbr.rel (%p1515_p12) target bundleno = 428 (0x1ac), region = 40  ;;  %s1384_s27 = sshll.u32 (!%p1515_p12), %s1381_s1, 2 }
  0x99   : > { %s298_s7 = scalar_lea.sflag (!%p1515_p12), [#allocation3], %s1381_s1  ;;  %s301_s10 = scalar_lea.vmem (!%p1515_p12), [#allocation2], %s1384_s27 }
  0x9f   : > { %1066 = dma.done.wait (%p1322_p2), %s298_s7, 64  }
  0xa0   : > { %1068 = vsyncadd (%p1322_p2), %s298_s7, 4294967232  ;;  %p1516_p4 = scmp.ne.s32.totalorder %s1503_s28, 0 }
  0xa2   : > { %1070 = dma.done.wait (%p1516_p4), [#allocation6], 272  }
  0xa3   : > { %1072 = vsyncadd (%p1516_p4), [#allocation6], 4294967024 }
  0xa4   : > { %1074 = dma.done.wait (%p1516_p4), [#allocation9], 272  }
  0xa5   : > { %1076 = vsyncadd (%p1516_p4), [#allocation9], 4294967024  ;;  %v1116_v0 = vmov 0.0   ;;  %vm1117_vm0 = vmmov 0   ;;  %v839_v1 = vld [vmem:[#allocation5] sm:$0xff]   ;;  %v840_v2 = vld [vmem:[#allocation8] sm:$0xff]  }
  0xa6   : > { %711 = vmatprep.subr.bf16.mxu0 %v1116_v0  ;;  %719 = vmatprep.subr.bf16.mxu1 %v1116_v0  ;;  %v841_v3 = vld [vmem:[#allocation5 + $0x8] sm:$0xff]   ;;  %v842_v4 = vld [vmem:[#allocation8 + $0x8] sm:$0xff]   ;;  %vm376_vm1 = vcmask 261120   ;;  %v691_v6 = vld [vmem:[#allocation7] ss:$0 sm:$0xff]  ;;  %s701_s28 = sshll.u32 %s1099_s24, 6 }
  0xa7   : > { %715 = vmatprep.mubr.msk.bf16.mxu0 %vm1117_vm0, %v1116_v0  ;;  %723 = vmatprep.mubr.msk.bf16.mxu1 %vm1117_vm0, %v1116_v0  ;;  %v352_v5 = vld [vmem:[%s301_s10] sm:$0xf]  ;;  %v695_v7 = vld [vmem:[#allocation10] ss:$0 sm:$0xff]  ;;  %s343_s29 = scalar_lea.vmem [#allocation11], %s1384_s27  ;;  %s350_s9 = scalar_lea.vmem [#allocation12], %s1384_s27 }
  0xa8   : > { %712 = vmatpush3.bf16.msra.mxu0 %v839_v1  ;;  %720 = vmatpush3.bf16.msra.mxu1 %v840_v2  ;;  %s508_s15 = sshll.u32 %s343_s29, 4  ;;  %s522_s8 = sshll.u32 %s350_s9, 4  ;;  %vm484_vm2 = vcmask 257024   ;;  %s1410_s15 = int_to_ptr.vmem [resolvable:$true] %s508_s15  ;;  %s1417_s8 = int_to_ptr.vmem [resolvable:$true] %s522_s8 }
  0xa9   : > { %713 = vmatprep.subr.bf16.mxu0 %v1116_v0  ;;  %721 = vmatprep.subr.bf16.mxu1 %v1116_v0  ;;  %s1408_s20 = scalar_lea.hbm %s1495_s5, %s701_s28  ;;  %s1415_s30 = scalar_lea.hbm %s1496_s6, %s701_s28 }
  0xaa   : > { %s489_s12 = scalar_lea.sflag [#allocation4], %s1381_s1  ;;  %s985_s7 = scalar_lea.vmem %s1410_s15, 64 }
  0xab   : > { %p986_p2 = scmp.ne.s32.totalorder %s1410_s15, %s985_s7  ;;  %p1517_p9 = scmp.ne.s32.totalorder %s1512_s16, 0 }
  0xac   : > { %714 = vmatpush3.bf16.msra.mxu0 %v841_v3  ;;  %722 = vmatpush3.bf16.msra.mxu1 %v842_v4  ;;  %s1118_s10 = smov [#allocation11]  }
  0xad   : > { %p987_p10 = pnand %p986_p2, %p1517_p9  ;;  %s989_s13 = sshll.u32 %s1118_s10, 4  ;;  %s990_s13 = int_to_ptr.vmem [resolvable:$false] %s989_s13 }
  0xae   : > { %s991_s14 = scalar_lea.vmem %s990_s13, 128  ;;  %p992_p0 = scmp.lt.s32.totalorder %s1410_s15, %s990_s13 }
  0xaf   : > { %716 = vmatmul.mubr.msk.bf16.vlgmr.msra.gmra.mrb[0].mxu0 %vm376_vm1, %v352_v5  ;;  %724 = vmatmul.mubr.msk.bf16.vlgmr.msra.gmra.mrb[0].mxu1 %vm376_vm1, %v352_v5  ;;  %p988_p11 = pneg %p987_p10  ;;  %p993_p7 = scmp.lt.s32.totalorder %s991_s14, %s985_s7 }
  0xb1   : > { %p994_p5 = por %p993_p7, %p992_p0 }
  0xb3   : > { %p995_p8 = pnand %p994_p5, %p988_p11 }
 0x182   : > { %v414_v8 = vpop.f32.mrb[0].mxu0  ;;  %v477_v10 = vpop.f32.mrb[0].mxu1 }
 0x183   : > { %v415_v9 = vadd.f32 %v691_v6, %v414_v8  ;;  %v717_v11 = vpop.f32.mrb[1].mxu0  ;;  %v478_v12 = vadd.f32 %v695_v7, %v477_v10  ;;  %v725_v13 = vpop.f32.mrb[1].mxu1 }
 0x184   : > { %v417_v14 = vpop.f32.mrb[2].mxu0  ;;  %v480_v16 = vpop.f32.mrb[2].mxu1 }
 0x185   : > { %v483_v15 = vpack.c.bf16 %v415_v9, %v415_v9  ;;  %v718_v17 = vpop.f32.mrb[3].mxu0  ;;  %v486_v18 = vpack.c.bf16 %v478_v12, %v478_v12  ;;  %v726_v19 = vpop.f32.mrb[3].mxu1 }
 0x187   : > { %485 = vst.msk [vmem:[%s343_s29] sm:$0xf] %vm484_vm2, %v483_v15 }
 0x188   : > { %998 = shalt.err (!%p995_p8)
}
 0x189   : > { %s999_s28 = scalar_lea.hbm %s1408_s20, 64  ;;  %s1003_s18 = scalar_lea.hbm %s1495_s5, 128 }
 0x18a   : > { %p1000_p1 = scmp.ne.s32.totalorder %s1408_s20, %s999_s28  ;;  %p1004_p13 = scmp.lt.u32.totalorder %s1408_s20, %s1495_s5 }
 0x18b   : > { %p1005_p12 = scmp.lt.u32.totalorder %s1003_s18, %s999_s28  ;;  %p1007_p2 = scmp.lt.u32.totalorder %s999_s28, %s1408_s20 }
 0x18c   : > { %p1001_p3 = pnand %p1000_p1, %p1517_p9 }
 0x18d   : > { %p1006_p4 = por %p1005_p12, %p1004_p13 }
 0x18e   : > { %p1002_p6 = pneg %p1001_p3 }
 0x18f   : > { %p1008_p10 = por %p1007_p2, %p1006_p4 }
 0x191   : > { %p1009_p11 = pnand %p1008_p10, %p1002_p6 }
 0x193   : > { %1012 = shalt.err (!%p1009_p11)
}
 0x194   : > { %745 = dma.vmem_to_hbm [thread:$0]  (%p1517_p9), %s1410_s15, 64, %s1408_s20, %s489_s12   ;;  %487 = vst.msk [vmem:[%s350_s9] sm:$0xf] %vm484_vm2, %v486_v18 }
 0x195   : > { %s494_s7 = scalar_lea.sflag [#allocation13], %s1381_s1  ;;  %s1013_s14 = scalar_lea.vmem %s1417_s8, 64 }
 0x196   : > { %p1014_p0 = scmp.ne.s32.totalorder %s1417_s8, %s1013_s14  ;;  %s1119_s28 = smov [#allocation12]  }
 0x197   : > { %s1017_s29 = sshll.u32 %s1119_s28, 4  ;;  %s1018_s29 = int_to_ptr.vmem [resolvable:$false] %s1017_s29 }
 0x198   : > { %p1015_p7 = pnand %p1014_p0, %p1517_p9  ;;  %s1019_s24 = scalar_lea.vmem %s1018_s29, 128 }
 0x199   : > { %p1020_p8 = scmp.lt.s32.totalorder %s1417_s8, %s1018_s29  ;;  %p1021_p1 = scmp.lt.s32.totalorder %s1019_s24, %s1013_s14 }
 0x19a   : > { %p1016_p5 = pneg %p1015_p7 }
 0x19b   : > { %p1022_p3 = por %p1021_p1, %p1020_p8 }
 0x19d   : > { %p1023_p6 = pnand %p1022_p3, %p1016_p5 }
 0x19f   : > { %1026 = shalt.err (!%p1023_p6)
}
 0x1a0   : > { %s1027_s1 = scalar_lea.hbm %s1415_s30, 64  ;;  %s1031_s9 = scalar_lea.hbm %s1496_s6, 128 }
 0x1a1   : > { %p1028_p13 = scmp.ne.s32.totalorder %s1415_s30, %s1027_s1  ;;  %p1032_p2 = scmp.lt.u32.totalorder %s1415_s30, %s1496_s6 }
 0x1a2   : > { %p1033_p10 = scmp.lt.u32.totalorder %s1031_s9, %s1027_s1  ;;  %p1035_p0 = scmp.lt.u32.totalorder %s1027_s1, %s1415_s30 }
 0x1a3   : > { %p1029_p12 = pnand %p1028_p13, %p1517_p9 }
 0x1a4   : > { %p1034_p11 = por %p1033_p10, %p1032_p2 }
 0x1a5   : > { %p1030_p4 = pneg %p1029_p12 }
 0x1a6   : > { %p1036_p7 = por %p1035_p0, %p1034_p11 }
 0x1a8   : > { %p1037_p5 = pnand %p1036_p7, %p1030_p4 }
 0x1aa   : > { %1040 = shalt.err (!%p1037_p5)
}
 0x1ab   : > { %746 = dma.vmem_to_hbm [thread:$0]  (%p1517_p9), %s1417_s8, 64, %s1415_s30, %s494_s7  }
 0x1ac PF: > { %s534_s18 = sand.u32 1, %s1087_s21   ;;  %p1518_p8 = scmp.ne.s32.totalorder %s1513_s19, 0 }
 0x1ad   : > { %p1519_p1 = scmp.ge.s32.totalorder %s1107_s26, 2  ;;  %s535_s10 = scalar_lea.sflag [#allocation4], %s534_s18 }
 0x1af   : > { %p767_p3 = pnand %p1519_p1, %p1518_p8 }
 0x1b1   : > { %1078 = dma.done.wait (!%p767_p3), %s535_s10, 64  }
 0x1b2   : > { %1080 = vsyncadd (!%p767_p3), %s535_s10, 4294967232  ;;  %s544_s13 = scalar_lea.sflag [#allocation13], %s534_s18 }
 0x1b3   : > { %1082 = dma.done.wait (!%p767_p3), %s544_s13, 64  }
 0x1b4   : > { %1084 = vsyncadd (!%p767_p3), %s544_s13, 4294967232  ;;  %s28_s26 = sadd.s32 1, %s1107_s26   ;;  %s1520_s21 = smov %s1091_s22 }
 0x1b5   : > { %p25_p6 = scmp.ge.s32.totalorder %s28_s26, 4   ;;  %s1521_s22 = smov %s1095_s23 }
 0x1b6   : > { %s1522_s23 = smov %s1331_s17  ;;  %s1523_s24 = smov %s1103_s25 }
 0x1b7   : > { %s1524_s25 = smov %s1526_s11  ;;  %27 = sbr.rel (!%p25_p6) target bundleno = 12 (0xc), region = 118 }
 0x1be   :  { %549 = vsyncpa [#allocation3], 1 }
 0x1bf   :  { %551 = vsyncpa [#allocation3 + $0x1], 1 }
 0x1c0   :  { %552 = vsyncpa [#allocation6], 1 }
 0x1c1   :  { %553 = vsyncpa [#allocation9], 1 }
 0x1c2   :  { %554 = vsyncpa [#allocation4], 1 }
 0x1c3   :  { %556 = vsyncpa [#allocation4 + $0x1], 1 }
 0x1c4   :  { %557 = vsyncpa [#allocation13], 1 }
 0x1c5   :  { %559 = vsyncpa [#allocation13 + $0x1], 1 }

// kernel: tpu_custom_call.1
= control target key start
LH: loop header
LB: loop body
LE: loop exit
PB: predicated region body
PF: predicated region fallthrough
CT: control target
= control target key end

     0   :  { %s1490_s0 = inlined_call_operand.hbm [shape: bf16[2,8,32], index: 0, kind: input, shape index: {}]   ;;  %s1491_s1 = inlined_call_operand.hbm [shape: bf16[32,32], index: 1, kind: input, shape index: {}]   ;;  %s1492_s2 = inlined_call_operand.hbm [shape: f32[1,32], index: 2, kind: input, shape index: {}]   ;;  %s1493_s3 = inlined_call_operand.hbm [shape: bf16[32,32], index: 3, kind: input, shape index: {}]   ;;  %s1494_s4 = inlined_call_operand.hbm [shape: f32[1,32], index: 4, kind: input, shape index: {}]   ;;  %s1495_s5 = inlined_call_operand.hbm [shape: bf16[2,8,32], index: 5, kind: output, shape index: {0}]   ;;  %s1496_s6 = inlined_call_operand.hbm [shape: bf16[2,8,32], index: 6, kind: output, shape index: {1}]  }
   0x1   :  { %1502 = sst [smem:[#allocation19_spill]] %s1491_s1 }
   0x2   :  { %12 = vsyncpa [#allocation3], 0 }
   0x3   :  { %14 = vsyncpa [#allocation3 + $0x1], 0 }
   0x4   :  { %15 = vsyncpa [#allocation6], 0 }
   0x5   :  { %16 = vsyncpa [#allocation9], 0 }
   0x6   :  { %17 = vsyncpa [#allocation4], 0 }
   0x7   :  { %19 = vsyncpa [#allocation4 + $0x1], 0 }
   0x8   :  { %20 = vsyncpa [#allocation13], 0 }
   0x9   :  { %22 = vsyncpa [#allocation13 + $0x1], 0  ;;  %s1155_s21 = smov 0   ;;  %s1157_s22 = smov 0  }
   0xa   :  { %s1159_s23 = smov 0   ;;  %s1161_s24 = smov 0  }
   0xb   :  { %s1163_s25 = smov 0   ;;  %s1165_s26 = smov 0  }
   0xc LB: > { %s1497_s27 = sadd.s32 4294967295, %s1107_s26   ;;  %p675_p0 = scmp.ge.s32.totalorder %s1107_s26, 1  ;;  %s1107_s26 = sphi %s1165_s26, %s28_s26   ;;  %s1103_s25 = sphi %s1163_s25, %s1524_s25   ;;  %s1099_s24 = sphi %s1161_s24, %s1523_s24   ;;  %s1095_s23 = sphi %s1159_s23, %s1522_s23   ;;  %s1091_s22 = sphi %s1157_s22, %s1521_s22   ;;  %s1087_s21 = sphi %s1155_s21, %s1520_s21  }
   0xd   : > { %p1189_p1 = scmp.eq.s32.totalorder %s1497_s27, 0  ;;  %p213_p2 = scmp.lt.s32.totalorder %s1107_s26, 3 }
   0xe   : > { %s1109_s30 = smov [#allocation5]   ;;  %s1110_s9 = smov [#allocation8]  }
   0xf   : > { %s1503_s28 = scalar_select %p1189_p1, 1, 0 }
  0x10   : > { %p1194_p3 = pnand %p675_p0, %p213_p2  ;;  %s225_s7 = sshll.u32 %s1109_s30, 4  ;;  %s1198_s7 = int_to_ptr.vmem [resolvable:$true] %s225_s7 }
  0x11   : > { %s249_s10 = sshll.u32 %s1110_s9, 4  ;;  %s1111_s11 = smov [#allocation7]   ;;  %s1209_s10 = int_to_ptr.vmem [resolvable:$true] %s249_s10 }
  0x12   : > { %s1504_s29 = scalar_select %p1194_p3, 1, 0 }
  0x13   : > { %p749_p4 = pneg %p1194_p3  ;;  %s1211_s12 = sshll.u32 %s1111_s11, 4  ;;  %s240_s12 = int_to_ptr.vmem [resolvable:$true] %s1211_s12 }
  0x14   : > { %s1506_s1 = sld [smem:[#allocation19_spill]] }
  0x15   : > { %p1205_p6 = pnand %p749_p4, %p1189_p1 }
  0x17   : > { %p1221_p8 = pneg %p1205_p6 }
  0x1a   : > { %s843_s15 = scalar_lea.hbm %s1506_s1, 256 }
  0x1b   : > { %p844_p7 = scmp.ne.s32.totalorder %s1506_s1, %s843_s15  ;;  %p850_p11 = scmp.lt.u32.totalorder %s843_s15, %s1506_s1 }
  0x1d   : > { %p846_p9 = pnand %p1221_p8, %p844_p7 }
  0x1f   : > { %p847_p10 = pneg %p846_p9 }
  0x21   : > { %p852_p12 = pnand %p850_p11, %p847_p10 }
  0x23   : > { %855 = shalt.err (!%p852_p12)
}
  0x24   : > { %s856_s30 = scalar_lea.vmem %s1198_s7, 256  ;;  %p864_p4 = scmp.lt.s32.totalorder %s1198_s7, %s1198_s7 }
  0x25   : > { %p857_p13 = scmp.ne.s32.totalorder %s1198_s7, %s856_s30  ;;  %p865_p5 = scmp.lt.s32.totalorder %s856_s30, %s856_s30 }
  0x27   : > { %p859_p0 = pnand %p857_p13, %p1221_p8  ;;  %p866_p7 = por %p865_p5, %p864_p4 }
  0x29   : > { %p860_p2 = pneg %p859_p0 }
  0x2b   : > { %p867_p9 = pnand %p866_p7, %p860_p2 }
  0x2d   : > { %870 = shalt.err (!%p867_p9)
}
  0x2e   : > { %s1112_s9 = smov 64   ;;  %s1113_s11 = smov 4  }
  0x2f   : > { %752 = dma.hbm_to_vmem [thread:$0]  (!%p1205_p6), %s1506_s1, 256, %s1198_s7, [#allocation6], %s1112_s9, %s1112_s9, %s1113_s11  }
  0x30   : > { %s871_s17 = scalar_lea.hbm %s1493_s3, 256 }
  0x31   : > { %p872_p5 = scmp.ne.s32.totalorder %s1493_s3, %s871_s17  ;;  %p878_p12 = scmp.lt.u32.totalorder %s871_s17, %s1493_s3 }
  0x33   : > { %p874_p10 = pnand %p872_p5, %p1221_p8 }
  0x35   : > { %p875_p11 = pneg %p874_p10 }
  0x37   : > { %p880_p13 = pnand %p878_p12, %p875_p11 }
  0x39   : > { %883 = shalt.err (!%p880_p13)
}
  0x3a   : > { %s884_s7 = scalar_lea.vmem %s1209_s10, 256  ;;  %p892_p7 = scmp.lt.s32.totalorder %s1209_s10, %s1209_s10 }
  0x3b   : > { %p885_p0 = scmp.ne.s32.totalorder %s1209_s10, %s884_s7  ;;  %p893_p9 = scmp.lt.s32.totalorder %s884_s7, %s884_s7 }
  0x3d   : > { %p887_p2 = pnand %p885_p0, %p1221_p8  ;;  %p894_p5 = por %p893_p9, %p892_p7 }
  0x3f   : > { %p888_p4 = pneg %p887_p2 }
  0x41   : > { %p895_p10 = pnand %p894_p5, %p888_p4 }
  0x43   : > { %898 = shalt.err (!%p895_p10)
}
  0x44   : > { %758 = dma.hbm_to_vmem [thread:$0]  (!%p1205_p6), %s1493_s3, 256, %s1209_s10, [#allocation9], %s1112_s9, %s1112_s9, %s1113_s11  }
  0x45   : > { %s899_s16 = scalar_lea.hbm %s1492_s2, 16 }
  0x46   : > { %p900_p11 = scmp.ne.s32.totalorder %s1492_s2, %s899_s16  ;;  %p906_p0 = scmp.lt.u32.totalorder %s899_s16, %s1492_s2 }
  0x48   : > { %p902_p12 = pnand %p900_p11, %p1221_p8 }
  0x4a   : > { %p903_p13 = pneg %p902_p12 }
  0x4c   : > { %p908_p2 = pnand %p906_p0, %p903_p13 }
  0x4e   : > { %911 = shalt.err (!%p908_p2)
}
  0x4f   : > { %s912_s7 = scalar_lea.vmem %s240_s12, 16  ;;  %s919_s10 = scalar_lea.vmem %s240_s12, 32 }
  0x50   : > { %p913_p4 = scmp.ne.s32.totalorder %s240_s12, %s912_s7  ;;  %p920_p5 = scmp.lt.s32.totalorder %s240_s12, %s240_s12 }
  0x51   : > { %p921_p10 = scmp.lt.s32.totalorder %s919_s10, %s912_s7 }
  0x52   : > { %p915_p7 = pnand %p913_p4, %p1221_p8 }
  0x53   : > { %p922_p3 = por %p921_p10, %p920_p5 }
  0x54   : > { %p916_p9 = pneg %p915_p7 }
  0x56   : > { %p923_p1 = pnand %p922_p3, %p916_p9 }
  0x58   : > { %926 = shalt.err (!%p923_p1)
}
  0x59   : > { %755 = dma.hbm_to_vmem [thread:$0]  (!%p1205_p6), %s1492_s2, 16, %s240_s12, [#allocation6]  }
  0x5a   : > { %s1114_s27 = smov [#allocation10]   ;;  %s927_s16 = scalar_lea.hbm %s1494_s4, 16 }
  0x5b   : > { %s263_s13 = sshll.u32 %s1114_s27, 4  ;;  %p928_p11 = scmp.ne.s32.totalorder %s1494_s4, %s927_s16  ;;  %s264_s13 = int_to_ptr.vmem [resolvable:$true] %s263_s13 }
  0x5c   : > { %p934_p12 = scmp.lt.u32.totalorder %s927_s16, %s1494_s4 }
  0x5d   : > { %p930_p1 = pnand %p928_p11, %p1221_p8 }
  0x5f   : > { %p931_p3 = pneg %p930_p1 }
  0x61   : > { %p936_p13 = pnand %p934_p12, %p931_p3 }
  0x63   : > { %939 = shalt.err (!%p936_p13)
}
  0x64   : > { %s940_s12 = scalar_lea.vmem %s264_s13, 16  ;;  %s947_s7 = scalar_lea.vmem %s264_s13, 32 }
  0x65   : > { %p941_p0 = scmp.ne.s32.totalorder %s264_s13, %s940_s12  ;;  %p948_p7 = scmp.lt.s32.totalorder %s264_s13, %s264_s13 }
  0x66   : > { %p949_p9 = scmp.lt.s32.totalorder %s947_s7, %s940_s12 }
  0x67   : > { %p943_p2 = pnand %p941_p0, %p1221_p8 }
  0x68   : > { %p950_p5 = por %p949_p9, %p948_p7 }
  0x69   : > { %p944_p4 = pneg %p943_p2 }
  0x6b   : > { %p951_p10 = pnand %p950_p5, %p944_p4 }
  0x6d   : > { %954 = shalt.err (!%p951_p10)
}
  0x6e   : > { %761 = dma.hbm_to_vmem [thread:$0]  (!%p1205_p6), %s1494_s4, 16, %s264_s13, [#allocation9]  }
  0x6f   : > { %s674_s18 = sadd.s32 4294967294, %s1107_s26   ;;  %s40_s11 = sadd.s32 1, %s1103_s25 }
  0x70   : > { %p42_p8 = scmp.ge.s32.totalorder %s40_s11, 2  ;;  %s49_s8 = sadd.s32 1, %s1095_s23 }
  0x71   : > { %p56_p11 = scmp.ne.s32.totalorder %s1095_s23, %s1091_s22  ;;  %p57_p1 = scmp.eq.s32.totalorder %s1107_s26, 0 }
  0x72   : > { %s1526_s11 = smov (%p42_p8, %s40_s11), 0  ;;  %p62_p12 = scmp.ne.s32.totalorder %s1091_s22, %s1087_s21 }
  0x73   : > { %p1310_p3 = por %p57_p1, %p56_p11  ;;  %s44_s13 = ssub.s32 %s1103_s25, %s1526_s11 }
  0x74   : > { %s1509_s14 = sadd.s32 4294967295, %s1107_s26   ;;  %p47_p13 = scmp.eq.s32.totalorder %s44_s13, 0 }
  0x75   : > { %p172_p6 = scmp.eq.s32.totalorder %s1509_s14, 1  ;;  %p1510_p0 = scmp.ne.s32.totalorder %s1503_s28, 0 }
  0x76   : > { %p178_p7 = scmp.eq.s32.totalorder %s674_s18, 1  ;;  %p777_p5 = scmp.lt.s32.totalorder %s1107_s26, 2 }
  0x77   : > { %p1322_p2 = por %p1510_p0, %p62_p12  ;;  %p1326_p4 = por %p172_p6, %p56_p11 }
  0x78   : > { %s1331_s17 = scalar_select %p47_p13, %s1095_s23, %s49_s8  }
  0x79   : > { %s1512_s16 = scalar_select %p1326_p4, 1, 0 }
  0x7a   : > { %p1333_p9 = por %p178_p7, %p62_p12  ;;  %s274_s20 = sand.u32 1, %s1095_s23  }
  0x7b   : > { %s682_s30 = sshll.u32 %s1103_s25, 6  ;;  %s681_s12 = sshll.u32 %s274_s20, 2 }
  0x7c   : > { %s1513_s19 = scalar_select %p1333_p9, 1, 0 }
  0x7d   : > { %s1343_s9 = scalar_lea.hbm %s1490_s0, %s682_s30  ;;  %s278_s18 = scalar_lea.vmem [#allocation2], %s681_s12 }
  0x7e   : > { %s286_s8 = sshll.u32 %s278_s18, 4  ;;  %p1347_p10 = pnand %p777_p5, %p1310_p3  ;;  %s1351_s8 = int_to_ptr.vmem [resolvable:$true] %s286_s8 }
  0x7f   : > { %s275_s14 = scalar_lea.sflag [#allocation3], %s274_s20  ;;  %s955_s1 = scalar_lea.hbm %s1343_s9, 64 }
  0x80   : > { %p956_p8 = scmp.ne.s32.totalorder %s1343_s9, %s955_s1  ;;  %p957_p11 = pneg %p1347_p10 }
  0x81   : > { %s960_s27 = scalar_lea.hbm %s1490_s0, 128  ;;  %p961_p3 = scmp.lt.u32.totalorder %s1343_s9, %s1490_s0 }
  0x82   : > { %p958_p1 = pnand %p957_p11, %p956_p8  ;;  %p962_p6 = scmp.lt.u32.totalorder %s960_s27, %s955_s1 }
  0x83   : > { %p964_p0 = scmp.lt.u32.totalorder %s955_s1, %s1343_s9 }
  0x84   : > { %p959_p12 = pneg %p958_p1  ;;  %p963_p13 = por %p962_p6, %p961_p3 }
  0x86   : > { %p965_p7 = por %p964_p0, %p963_p13 }
  0x88   : > { %p966_p5 = pnand %p965_p7, %p959_p12 }
  0x8a   : > { %969 = shalt.err (!%p966_p5)
}
  0x8b   : > { %s970_s20 = scalar_lea.vmem %s1351_s8, 64  ;;  %s1115_s18 = smov [#allocation2]  }
  0x8c   : > { %p971_p8 = scmp.ne.s32.totalorder %s1351_s8, %s970_s20  ;;  %s975_s30 = sshll.u32 %s1115_s18, 4  ;;  %s976_s30 = int_to_ptr.vmem [resolvable:$false] %s975_s30 }
  0x8d   : > { %s977_s12 = scalar_lea.vmem %s976_s30, 128  ;;  %p978_p4 = scmp.lt.s32.totalorder %s1351_s8, %s976_s30 }
  0x8e   : > { %p973_p1 = pnand %p971_p8, %p957_p11  ;;  %p979_p3 = scmp.lt.s32.totalorder %s977_s12, %s970_s20 }
  0x90   : > { %p974_p9 = pneg %p973_p1  ;;  %p980_p6 = por %p979_p3, %p978_p4 }
  0x92   : > { %p981_p13 = pnand %p980_p6, %p974_p9 }
  0x94   : > { %984 = shalt.err (!%p981_p13)
}
  0x95   : > { %765 = dma.hbm_to_vmem [thread:$0]  (!%p1347_p10), %s1343_s9, 64, %s1351_s8, %s275_s14  }
  0x96   : > { %p1515_p12 = scmp.ne.s32.totalorder %s1504_s29, 0 }
  0x97   : > { %s1381_s1 = sand.u32 (!%p1515_p12), 1, %s1091_s22  }
  0x98   : > { %295 = sbr.rel (%p1515_p12) target bundleno = 428 (0x1ac), region = 40  ;;  %s1384_s27 = sshll.u32 (!%p1515_p12), %s1381_s1, 2 }
  0x99   : > { %s298_s7 = scalar_lea.sflag (!%p1515_p12), [#allocation3], %s1381_s1  ;;  %s301_s10 = scalar_lea.vmem (!%p1515_p12), [#allocation2], %s1384_s27 }
  0x9f   : > { %1066 = dma.done.wait (%p1322_p2), %s298_s7, 64  }
  0xa0   : > { %1068 = vsyncadd (%p1322_p2), %s298_s7, 4294967232  ;;  %p1516_p4 = scmp.ne.s32.totalorder %s1503_s28, 0 }
  0xa2   : > { %1070 = dma.done.wait (%p1516_p4), [#allocation6], 272  }
  0xa3   : > { %1072 = vsyncadd (%p1516_p4), [#allocation6], 4294967024 }
  0xa4   : > { %1074 = dma.done.wait (%p1516_p4), [#allocation9], 272  }
  0xa5   : > { %1076 = vsyncadd (%p1516_p4), [#allocation9], 4294967024  ;;  %v1116_v0 = vmov 0.0   ;;  %vm1117_vm0 = vmmov 0   ;;  %v839_v1 = vld [vmem:[#allocation5] sm:$0xff]   ;;  %v840_v2 = vld [vmem:[#allocation8] sm:$0xff]  }
  0xa6   : > { %711 = vmatprep.subr.bf16.mxu0 %v1116_v0  ;;  %719 = vmatprep.subr.bf16.mxu1 %v1116_v0  ;;  %v841_v3 = vld [vmem:[#allocation5 + $0x8] sm:$0xff]   ;;  %v842_v4 = vld [vmem:[#allocation8 + $0x8] sm:$0xff]   ;;  %vm376_vm1 = vcmask 261120   ;;  %v691_v6 = vld [vmem:[#allocation7] ss:$0 sm:$0xff]  ;;  %s701_s28 = sshll.u32 %s1099_s24, 6 }
  0xa7   : > { %715 = vmatprep.mubr.msk.bf16.mxu0 %vm1117_vm0, %v1116_v0  ;;  %723 = vmatprep.mubr.msk.bf16.mxu1 %vm1117_vm0, %v1116_v0  ;;  %v352_v5 = vld [vmem:[%s301_s10] sm:$0xf]  ;;  %v695_v7 = vld [vmem:[#allocation10] ss:$0 sm:$0xff]  ;;  %s343_s29 = scalar_lea.vmem [#allocation11], %s1384_s27  ;;  %s350_s9 = scalar_lea.vmem [#allocation12], %s1384_s27 }
  0xa8   : > { %712 = vmatpush3.bf16.msra.mxu0 %v839_v1  ;;  %720 = vmatpush3.bf16.msra.mxu1 %v840_v2  ;;  %s508_s15 = sshll.u32 %s343_s29, 4  ;;  %s522_s8 = sshll.u32 %s350_s9, 4  ;;  %vm484_vm2 = vcmask 257024   ;;  %s1410_s15 = int_to_ptr.vmem [resolvable:$true] %s508_s15  ;;  %s1417_s8 = int_to_ptr.vmem [resolvable:$true] %s522_s8 }
  0xa9   : > { %713 = vmatprep.subr.bf16.mxu0 %v1116_v0  ;;  %721 = vmatprep.subr.bf16.mxu1 %v1116_v0  ;;  %s1408_s20 = scalar_lea.hbm %s1495_s5, %s701_s28  ;;  %s1415_s30 = scalar_lea.hbm %s1496_s6, %s701_s28 }
  0xaa   : > { %s489_s12 = scalar_lea.sflag [#allocation4], %s1381_s1  ;;  %s985_s7 = scalar_lea.vmem %s1410_s15, 64 }
  0xab   : > { %p986_p2 = scmp.ne.s32.totalorder %s1410_s15, %s985_s7  ;;  %p1517_p9 = scmp.ne.s32.totalorder %s1512_s16, 0 }
  0xac   : > { %714 = vmatpush3.bf16.msra.mxu0 %v841_v3  ;;  %722 = vmatpush3.bf16.msra.mxu1 %v842_v4  ;;  %s1118_s10 = smov [#allocation11]  }
  0xad   : > { %p987_p10 = pnand %p986_p2, %p1517_p9  ;;  %s989_s13 = sshll.u32 %s1118_s10, 4  ;;  %s990_s13 = int_to_ptr.vmem [resolvable:$false] %s989_s13 }
  0xae   : > { %s991_s14 = scalar_lea.vmem %s990_s13, 128  ;;  %p992_p0 = scmp.lt.s32.totalorder %s1410_s15, %s990_s13 }
  0xaf   : > { %716 = vmatmul.mubr.msk.bf16.vlgmr.msra.gmra.mrb[0].mxu0 %vm376_vm1, %v352_v5  ;;  %724 = vmatmul.mubr.msk.bf16.vlgmr.msra.gmra.mrb[0].mxu1 %vm376_vm1, %v352_v5  ;;  %p988_p11 = pneg %p987_p10  ;;  %p993_p7 = scmp.lt.s32.totalorder %s991_s14, %s985_s7 }
  0xb1   : > { %p994_p5 = por %p993_p7, %p992_p0 }
  0xb3   : > { %p995_p8 = pnand %p994_p5, %p988_p11 }
 0x182   : > { %v414_v8 = vpop.f32.mrb[0].mxu0  ;;  %v477_v10 = vpop.f32.mrb[0].mxu1 }
 0x183   : > { %v415_v9 = vadd.f32 %v691_v6, %v414_v8  ;;  %v717_v11 = vpop.f32.mrb[1].mxu0  ;;  %v478_v12 = vadd.f32 %v695_v7, %v477_v10  ;;  %v725_v13 = vpop.f32.mrb[1].mxu1 }
 0x184   : > { %v417_v14 = vpop.f32.mrb[2].mxu0  ;;  %v480_v16 = vpop.f32.mrb[2].mxu1 }
 0x185   : > { %v483_v15 = vpack.c.bf16 %v415_v9, %v415_v9  ;;  %v718_v17 = vpop.f32.mrb[3].mxu0  ;;  %v486_v18 = vpack.c.bf16 %v478_v12, %v478_v12  ;;  %v726_v19 = vpop.f32.mrb[3].mxu1 }
 0x187   : > { %485 = vst.msk [vmem:[%s343_s29] sm:$0xf] %vm484_vm2, %v483_v15 }
 0x188   : > { %998 = shalt.err (!%p995_p8)
}
 0x189   : > { %s999_s28 = scalar_lea.hbm %s1408_s20, 64  ;;  %s1003_s18 = scalar_lea.hbm %s1495_s5, 128 }
 0x18a   : > { %p1000_p1 = scmp.ne.s32.totalorder %s1408_s20, %s999_s28  ;;  %p1004_p13 = scmp.lt.u32.totalorder %s1408_s20, %s1495_s5 }
 0x18b   : > { %p1005_p12 = scmp.lt.u32.totalorder %s1003_s18, %s999_s28  ;;  %p1007_p2 = scmp.lt.u32.totalorder %s999_s28, %s1408_s20 }
 0x18c   : > { %p1001_p3 = pnand %p1000_p1, %p1517_p9 }
 0x18d   : > { %p1006_p4 = por %p1005_p12, %p1004_p13 }
 0x18e   : > { %p1002_p6 = pneg %p1001_p3 }
 0x18f   : > { %p1008_p10 = por %p1007_p2, %p1006_p4 }
 0x191   : > { %p1009_p11 = pnand %p1008_p10, %p1002_p6 }
 0x193   : > { %1012 = shalt.err (!%p1009_p11)
}
 0x194   : > { %745 = dma.vmem_to_hbm [thread:$0]  (%p1517_p9), %s1410_s15, 64, %s1408_s20, %s489_s12   ;;  %487 = vst.msk [vmem:[%s350_s9] sm:$0xf] %vm484_vm2, %v486_v18 }
 0x195   : > { %s494_s7 = scalar_lea.sflag [#allocation13], %s1381_s1  ;;  %s1013_s14 = scalar_lea.vmem %s1417_s8, 64 }
 0x196   : > { %p1014_p0 = scmp.ne.s32.totalorder %s1417_s8, %s1013_s14  ;;  %s1119_s28 = smov [#allocation12]  }
 0x197   : > { %s1017_s29 = sshll.u32 %s1119_s28, 4  ;;  %s1018_s29 = int_to_ptr.vmem [resolvable:$false] %s1017_s29 }
 0x198   : > { %p1015_p7 = pnand %p1014_p0, %p1517_p9  ;;  %s1019_s24 = scalar_lea.vmem %s1018_s29, 128 }
 0x199   : > { %p1020_p8 = scmp.lt.s32.totalorder %s1417_s8, %s1018_s29  ;;  %p1021_p1 = scmp.lt.s32.totalorder %s1019_s24, %s1013_s14 }
 0x19a   : > { %p1016_p5 = pneg %p1015_p7 }
 0x19b   : > { %p1022_p3 = por %p1021_p1, %p1020_p8 }
 0x19d   : > { %p1023_p6 = pnand %p1022_p3, %p1016_p5 }
 0x19f   : > { %1026 = shalt.err (!%p1023_p6)
}
 0x1a0   : > { %s1027_s1 = scalar_lea.hbm %s1415_s30, 64  ;;  %s1031_s9 = scalar_lea.hbm %s1496_s6, 128 }
 0x1a1   : > { %p1028_p13 = scmp.ne.s32.totalorder %s1415_s30, %s1027_s1  ;;  %p1032_p2 = scmp.lt.u32.totalorder %s1415_s30, %s1496_s6 }
 0x1a2   : > { %p1033_p10 = scmp.lt.u32.totalorder %s1031_s9, %s1027_s1  ;;  %p1035_p0 = scmp.lt.u32.totalorder %s1027_s1, %s1415_s30 }
 0x1a3   : > { %p1029_p12 = pnand %p1028_p13, %p1517_p9 }
 0x1a4   : > { %p1034_p11 = por %p1033_p10, %p1032_p2 }
 0x1a5   : > { %p1030_p4 = pneg %p1029_p12 }
 0x1a6   : > { %p1036_p7 = por %p1035_p0, %p1034_p11 }
 0x1a8   : > { %p1037_p5 = pnand %p1036_p7, %p1030_p4 }
 0x1aa   : > { %1040 = shalt.err (!%p1037_p5)
}
 0x1ab   : > { %746 = dma.vmem_to_hbm [thread:$0]  (%p1517_p9), %s1417_s8, 64, %s1415_s30, %s494_s7  }
 0x1ac PF: > { %s534_s18 = sand.u32 1, %s1087_s21   ;;  %p1518_p8 = scmp.ne.s32.totalorder %s1513_s19, 0 }
 0x1ad   : > { %p1519_p1 = scmp.ge.s32.totalorder %s1107_s26, 2  ;;  %s535_s10 = scalar_lea.sflag [#allocation4], %s534_s18 }
 0x1af   : > { %p767_p3 = pnand %p1519_p1, %p1518_p8 }
 0x1b1   : > { %1078 = dma.done.wait (!%p767_p3), %s535_s10, 64  }
 0x1b2   : > { %1080 = vsyncadd (!%p767_p3), %s535_s10, 4294967232  ;;  %s544_s13 = scalar_lea.sflag [#allocation13], %s534_s18 }
 0x1b3   : > { %1082 = dma.done.wait (!%p767_p3), %s544_s13, 64  }
 0x1b4   : > { %1084 = vsyncadd (!%p767_p3), %s544_s13, 4294967232  ;;  %s28_s26 = sadd.s32 1, %s1107_s26   ;;  %s1520_s21 = smov %s1091_s22 }
 0x1b5   : > { %p25_p6 = scmp.ge.s32.totalorder %s28_s26, 4   ;;  %s1521_s22 = smov %s1095_s23 }
 0x1b6   : > { %s1522_s23 = smov %s1331_s17  ;;  %s1523_s24 = smov %s1103_s25 }
 0x1b7   : > { %s1524_s25 = smov %s1526_s11  ;;  %27 = sbr.rel (!%p25_p6) target bundleno = 12 (0xc), region = 118 }
 0x1be   :  { %549 = vsyncpa [#allocation3], 1 }
 0x1bf   :  { %551 = vsyncpa [#allocation3 + $0x1], 1 }
 0x1c0   :  { %552 = vsyncpa [#allocation6], 1 }
 0x1c1   :  { %553 = vsyncpa [#allocation9], 1 }
 0x1c2   :  { %554 = vsyncpa [#allocation4], 1 }
 0x1c3   :  { %556 = vsyncpa [#allocation4 + $0x1], 1 }
 0x1c4   :  { %557 = vsyncpa [#allocation13], 1 }
 0x1c5   :  { %559 = vsyncpa [#allocation13 + $0x1], 1 }

</bundles_post_ra>
